<compile_context>
chip_gen: v5e
topology: v5e:2x2
jax: 0.10.0
libtpu: 0.0.40
codegen_flags: <defaults>
</compile_context>

<pallas_src>
import functools

import jax
import jax.numpy as jnp
from jax import lax
from jax.experimental import pallas as pl
from jax.experimental.pallas import tpu as pltpu


def _cdiv(a, b):
    return -(-a // b)


def _round_up(x, m):
    return _cdiv(x, m) * m


def _mlp_kernel(num_layers, z_ref, t_ref, *refs):
    """One batch tile of the MLP.

    z_ref : (TB, z_dim)  batch-major z tile (caller layout, no HBM transpose)
    t_ref : (1, TB)      lane-dense treatment/weight row
    refs  : (w0z, w0t_col, b0_col, w1T, b1_col, ..., out_ref)
            w0z : (z_dim, h0)        w0t_col / b0_col : (h0, 1)
            wlT : (fan_out, fan_in)  bl_col           : (fan_out, 1)
    out_ref: (1, TB)     lane-dense output row
    """
    out_ref = refs[-1]
    params = refs[:-1]

    w0z = params[0][...]   # (z_dim, h0)
    w0t = params[1][...]   # (h0, 1)
    b0 = params[2][...]    # (h0, 1)

    # Layer 0 in batch-major, canonical (M,K)x(K,N) MXU form: no implicit XLU
    # relayout of the lane-sparse (TB, z_dim) operand.
    h_bm = jnp.dot(z_ref[...], w0z, preferred_element_type=jnp.float32)  # (TB, h0)

    # Single explicit dense transpose; everything downstream is feature-major
    # (features on sublanes, batch on lanes) -> lane-dense matmuls and stores.
    h = h_bm.T                                                           # (h0, TB)
    h = h + w0t * t_ref[...] + b0
    if num_layers > 1:
        h = jnp.maximum(h, 0.0)

    idx = 3
    for l in range(1, num_layers):
        wT = params[idx][...]       # (fan_out, fan_in)
        b = params[idx + 1][...]    # (fan_out, 1)
        idx += 2
        h = jnp.dot(wT, h, preferred_element_type=jnp.float32) + b
        if l < num_layers - 1:      # final_activation=None -> no ReLU on last layer
            h = jnp.maximum(h, 0.0)

    out_ref[...] = h.astype(out_ref.dtype)


def mlp_forward(z, t_or_w, weights, biases, *, block_batch=2048):
    """Pallas MLP forward.  z: (B, z_dim), t_or_w: (B, 1).  Returns (B, 1) f32.

    weights[l]: (fan_in, fan_out), biases[l]: (1, fan_out) or (fan_out,),
    matching FullyConnected([z_dim+1] + hidden_sizes + [1]).
    """
    assert z.ndim == 2 and t_or_w.ndim == 2 and t_or_w.shape[1] == 1
    B, z_dim = z.shape
    num_layers = len(weights)
    assert weights[0].shape[0] == z_dim + 1
    assert weights[-1].shape[1] == 1

    # Batch lives on the lane axis of the feature-major activations -> TB is a
    # multiple of 128.  Balance tiles across the grid and force >= 2 steps when
    # B allows it, so the "parallel" batch axis can shard across v7x's 2 TCs.
    n_steps = _cdiv(B, block_batch)
    if B > 128:
        n_steps = max(n_steps, 2)
    TB = _round_up(_cdiv(B, n_steps), 128)
    grid = (_cdiv(B, TB),)

    z_f = z.astype(jnp.float32)                          # caller layout, no pad/copy
    t_row = t_or_w.astype(jnp.float32).reshape(1, B)     # contiguous, free reshape

    # Tiny parameter re-shaping (pre-bake these once per model in production).
    w0 = jnp.asarray(weights[0], jnp.float32)
    params = [
        w0[:z_dim, :],                                       # (z_dim, h0)
        w0[z_dim:, :].reshape(-1, 1),                        # (h0, 1) treatment col
        jnp.asarray(biases[0], jnp.float32).reshape(-1, 1),  # (h0, 1)
    ]
    for w, b in zip(weights[1:], biases[1:]):
        params.append(jnp.asarray(w, jnp.float32).T)              # (fan_out, fan_in)
        params.append(jnp.asarray(b, jnp.float32).reshape(-1, 1)) # (fan_out, 1)

    # z / t tiled over the batch grid; all weights & biases use constant
    # index_maps so they are DMA'd once and stay VMEM-resident across steps.
    in_specs = [
        pl.BlockSpec((TB, z_dim), lambda i: (i, 0)),
        pl.BlockSpec((1, TB), lambda i: (0, i)),
    ] + [pl.BlockSpec(p.shape, lambda i: (0, 0)) for p in params]
    out_spec = pl.BlockSpec((1, TB), lambda i: (0, i))     # lane-dense stores

    flops = 2 * B * sum(int(w.shape[0]) * int(w.shape[1]) for w in weights)
    bytes_accessed = int(B * z_dim * 4 + 2 * B * 4
                         + sum(int(p.size) * 4 for p in params))
    cost = pl.CostEstimate(flops=flops, transcendentals=0,
                           bytes_accessed=bytes_accessed)

    kernel = functools.partial(_mlp_kernel, num_layers)

    out_row = pl.pallas_call(
        kernel,
        out_shape=jax.ShapeDtypeStruct((1, B), jnp.float32),
        grid=grid,
        in_specs=in_specs,
        out_specs=out_spec,
        compiler_params=pltpu.CompilerParams(
            dimension_semantics=("parallel",),   # shard batch across v7x's 2 TCs
            vmem_limit_bytes=32 * 1024 * 1024,   # few MiB used; fits v7x 64 MiB
        ),
        cost_estimate=cost,
    )(z_f, t_row, *params)

    return out_row.reshape(B, 1)


def init_mlp_params(key, layer_sizes):
    """Deterministic synthetic init for FullyConnected([in] + hidden + [1])."""
    weights, biases = [], []
    for fan_in, fan_out in zip(layer_sizes[:-1], layer_sizes[1:]):
        key, wk, bk = jax.random.split(key, 3)
        scale = 1.0 / jnp.sqrt(fan_in)
        weights.append(jax.random.uniform(wk, (fan_in, fan_out), jnp.float32,
                                          minval=-scale, maxval=scale))
        biases.append(jax.random.uniform(bk, (1, fan_out), jnp.float32,
                                         minval=-scale, maxval=scale))
    return weights, biases


def mlp_forward_ref(z, t_or_w, weights, biases):
    """Plain-JAX reference (full f32 precision)."""
    h = jnp.concatenate((z, t_or_w), axis=1)
    for l, (w, b) in enumerate(zip(weights, biases)):
        h = jnp.dot(h, w, precision=lax.Precision.HIGHEST) + b
        if l < len(weights) - 1:
            h = jnp.maximum(h, 0.0)
    return h


if __name__ == "__main__":
    z_dim = 4
    hidden_sizes = [32, 32]
    layer_sizes = [z_dim + 1] + hidden_sizes + [1]

    key = jax.random.PRNGKey(0)
    key, pk = jax.random.split(key)
    weights, biases = init_mlp_params(pk, layer_sizes)

    # Case 1: tiny batch (single partial block, grid = 1).
    key, zk, tk = jax.random.split(key, 3)
    z = jax.random.normal(zk, (8, z_dim), jnp.float32)
    t_or_w = jax.random.normal(tk, (8, 1), jnp.float32)
    out = jax.block_until_ready(mlp_forward(z, t_or_w, weights, biases))
    ref = mlp_forward_ref(z, t_or_w, weights, biases)
    assert out.shape == (8, 1), out.shape
    assert jnp.allclose(out, ref, atol=1e-4, rtol=1e-4), (out, ref)

    # Case 2: non-multiple batch, multi-step grid with a partial last block.
    key, zk, tk = jax.random.split(key, 3)
    z2 = jax.random.normal(zk, (257, z_dim), jnp.float32)
    t2 = jax.random.normal(tk, (257, 1), jnp.float32)
    out2 = jax.block_until_ready(
        mlp_forward(z2, t2, weights, biases, block_batch=128))
    ref2 = mlp_forward_ref(z2, t2, weights, biases)
    assert out2.shape == (257, 1), out2.shape
    assert jnp.allclose(out2, ref2, atol=1e-4, rtol=1e-4), (out2, ref2)

    # Case 3: default tile sizing; grid forced to >= 2 balanced steps.
    key, zk, tk = jax.random.split(key, 3)
    z3 = jax.random.normal(zk, (1000, z_dim), jnp.float32)
    t3 = jax.random.normal(tk, (1000, 1), jnp.float32)
    out3 = jax.block_until_ready(mlp_forward(z3, t3, weights, biases))
    ref3 = mlp_forward_ref(z3, t3, weights, biases)
    assert out3.shape == (1000, 1), out3.shape
    assert jnp.allclose(out3, ref3, atol=1e-4, rtol=1e-4), (out3, ref3)

    print("KERNEL_OK")
</pallas_src>

<mosaic_0001>
module attributes {stable_mosaic.version = 11 : i64} {
  func.func @_mlp_kernel(%arg0: i32, %arg1: memref<128x4xf32, #tpu.memory_space<vmem>>, %arg2: memref<1x128xf32, #tpu.memory_space<vmem>>, %arg3: memref<4x32xf32, #tpu.memory_space<vmem>>, %arg4: memref<32x1xf32, #tpu.memory_space<vmem>>, %arg5: memref<32x1xf32, #tpu.memory_space<vmem>>, %arg6: memref<32x32xf32, #tpu.memory_space<vmem>>, %arg7: memref<32x1xf32, #tpu.memory_space<vmem>>, %arg8: memref<1x32xf32, #tpu.memory_space<vmem>>, %arg9: memref<1x1xf32, #tpu.memory_space<vmem>>, %arg10: memref<1x128xf32, #tpu.memory_space<vmem>>) attributes {dimension_semantics = [#tpu.dimension_semantics<parallel>], iteration_bounds = array<i64: 1>, scalar_prefetch = 0 : i64, scratch_operands = 0 : i64, tpu.core_type = #tpu.core_type<tc>, window_params = [{transform_indices = @transform_0, window_bounds = array<i64: 128, 4>}, {transform_indices = @transform_1, window_bounds = array<i64: 1, 128>}, {pipeline_mode = #tpu.pipeline_mode<synchronous>, transform_indices = @transform_2, window_bounds = array<i64: 4, 32>}, {pipeline_mode = #tpu.pipeline_mode<synchronous>, transform_indices = @transform_3, window_bounds = array<i64: 32, 1>}, {pipeline_mode = #tpu.pipeline_mode<synchronous>, transform_indices = @transform_4, window_bounds = array<i64: 32, 1>}, {pipeline_mode = #tpu.pipeline_mode<synchronous>, transform_indices = @transform_5, window_bounds = array<i64: 32, 32>}, {pipeline_mode = #tpu.pipeline_mode<synchronous>, transform_indices = @transform_6, window_bounds = array<i64: 32, 1>}, {pipeline_mode = #tpu.pipeline_mode<synchronous>, transform_indices = @transform_7, window_bounds = array<i64: 1, 32>}, {pipeline_mode = #tpu.pipeline_mode<synchronous>, transform_indices = @transform_8, window_bounds = array<i64: 1, 1>}, {transform_indices = @transform_9, window_bounds = array<i64: 1, 128>}]} {
    %c0 = arith.constant 0 : index
    %c0_0 = arith.constant 0 : index
    %0 = vector.load %arg3[%c0, %c0_0] : memref<4x32xf32, #tpu.memory_space<vmem>>, vector<4x32xf32>
    %c0_1 = arith.constant 0 : index
    %c0_2 = arith.constant 0 : index
    %1 = vector.load %arg4[%c0_1, %c0_2] : memref<32x1xf32, #tpu.memory_space<vmem>>, vector<32x1xf32>
    %c0_3 = arith.constant 0 : index
    %c0_4 = arith.constant 0 : index
    %2 = vector.load %arg5[%c0_3, %c0_4] : memref<32x1xf32, #tpu.memory_space<vmem>>, vector<32x1xf32>
    %c0_5 = arith.constant 0 : index
    %c0_6 = arith.constant 0 : index
    %3 = vector.load %arg1[%c0_5, %c0_6] : memref<128x4xf32, #tpu.memory_space<vmem>>, vector<128x4xf32>
    %cst = arith.constant dense<0.000000e+00> : vector<128x32xf32>
    %4 = tpu.matmul %3, %0, %cst {dimension_numbers = #tpu.dot_dimension_numbers<[1], [0], [0], [1], [0, 0, 1, 1], [], []>} : vector<128x4xf32>, vector<4x32xf32>, vector<128x32xf32> -> vector<128x32xf32>
    %5 = tpu.transpose %4, [1, 0] : vector<128x32xf32> -> vector<32x128xf32>
    %c0_7 = arith.constant 0 : index
    %c0_8 = arith.constant 0 : index
    %6 = vector.load %arg2[%c0_7, %c0_8] : memref<1x128xf32, #tpu.memory_space<vmem>>, vector<1x128xf32>
    %7 = vector.broadcast %1 : vector<32x1xf32> to vector<32x128xf32>
    %8 = vector.broadcast %6 : vector<1x128xf32> to vector<32x128xf32>
    %9 = arith.mulf %7, %8 : vector<32x128xf32>
    %10 = arith.addf %5, %9 : vector<32x128xf32>
    %11 = vector.broadcast %2 : vector<32x1xf32> to vector<32x128xf32>
    %12 = arith.addf %10, %11 : vector<32x128xf32>
    %cst_9 = arith.constant 0.000000e+00 : f32
    %13 = vector.broadcast %cst_9 : f32 to vector<32x128xf32>
    %14 = arith.maximumf %12, %13 : vector<32x128xf32>
    %c0_10 = arith.constant 0 : index
    %c0_11 = arith.constant 0 : index
    %15 = vector.load %arg6[%c0_10, %c0_11] : memref<32x32xf32, #tpu.memory_space<vmem>>, vector<32x32xf32>
    %c0_12 = arith.constant 0 : index
    %c0_13 = arith.constant 0 : index
    %16 = vector.load %arg7[%c0_12, %c0_13] : memref<32x1xf32, #tpu.memory_space<vmem>>, vector<32x1xf32>
    %cst_14 = arith.constant dense<0.000000e+00> : vector<32x128xf32>
    %17 = tpu.matmul %15, %14, %cst_14 {dimension_numbers = #tpu.dot_dimension_numbers<[1], [0], [0], [1], [0, 0, 1, 1], [], []>} : vector<32x32xf32>, vector<32x128xf32>, vector<32x128xf32> -> vector<32x128xf32>
    %18 = vector.broadcast %16 : vector<32x1xf32> to vector<32x128xf32>
    %19 = arith.addf %17, %18 : vector<32x128xf32>
    %cst_15 = arith.constant 0.000000e+00 : f32
    %20 = vector.broadcast %cst_15 : f32 to vector<32x128xf32>
    %21 = arith.maximumf %19, %20 : vector<32x128xf32>
    %c0_16 = arith.constant 0 : index
    %c0_17 = arith.constant 0 : index
    %22 = vector.load %arg8[%c0_16, %c0_17] : memref<1x32xf32, #tpu.memory_space<vmem>>, vector<1x32xf32>
    %c0_18 = arith.constant 0 : index
    %c0_19 = arith.constant 0 : index
    %23 = vector.load %arg9[%c0_18, %c0_19] : memref<1x1xf32, #tpu.memory_space<vmem>>, vector<1x1xf32>
    %cst_20 = arith.constant dense<0.000000e+00> : vector<1x128xf32>
    %24 = tpu.matmul %22, %21, %cst_20 {dimension_numbers = #tpu.dot_dimension_numbers<[1], [0], [0], [1], [0, 0, 1, 1], [], []>} : vector<1x32xf32>, vector<32x128xf32>, vector<1x128xf32> -> vector<1x128xf32>
    %25 = vector.broadcast %23 : vector<1x1xf32> to vector<1x128xf32>
    %26 = arith.addf %24, %25 : vector<1x128xf32>
    %c0_21 = arith.constant 0 : index
    %c0_22 = arith.constant 0 : index
    %27 = vector.load %arg10[%c0_21, %c0_22] : memref<1x128xf32, #tpu.memory_space<vmem>>, vector<1x128xf32>
    tpu.vector_store %arg10[%c0_21, %c0_22], %26 {strides = array<i32>} : memref<1x128xf32, #tpu.memory_space<vmem>>, vector<1x128xf32>,
    return
  }
  func.func @transform_0(%arg0: i32) -> (i32, i32) {
    %c0_i32 = arith.constant 0 : i32
    %c0_i32_0 = arith.constant 0 : i32
    return %arg0, %c0_i32 : i32, i32
  }
  func.func @transform_1(%arg0: i32) -> (i32, i32) {
    %c0_i32 = arith.constant 0 : i32
    %c0_i32_0 = arith.constant 0 : i32
    return %c0_i32, %arg0 : i32, i32
  }
  func.func @transform_2(%arg0: i32) -> (i32, i32) {
    %c0_i32 = arith.constant 0 : i32
    %c0_i32_0 = arith.constant 0 : i32
    %c0_i32_1 = arith.constant 0 : i32
    return %c0_i32, %c0_i32_0 : i32, i32
  }
  func.func @transform_3(%arg0: i32) -> (i32, i32) {
    %c0_i32 = arith.constant 0 : i32
    %c0_i32_0 = arith.constant 0 : i32
    %c0_i32_1 = arith.constant 0 : i32
    return %c0_i32, %c0_i32_0 : i32, i32
  }
  func.func @transform_4(%arg0: i32) -> (i32, i32) {
    %c0_i32 = arith.constant 0 : i32
    %c0_i32_0 = arith.constant 0 : i32
    %c0_i32_1 = arith.constant 0 : i32
    return %c0_i32, %c0_i32_0 : i32, i32
  }
  func.func @transform_5(%arg0: i32) -> (i32, i32) {
    %c0_i32 = arith.constant 0 : i32
    %c0_i32_0 = arith.constant 0 : i32
    %c0_i32_1 = arith.constant 0 : i32
    return %c0_i32, %c0_i32_0 : i32, i32
  }
  func.func @transform_6(%arg0: i32) -> (i32, i32) {
    %c0_i32 = arith.constant 0 : i32
    %c0_i32_0 = arith.constant 0 : i32
    %c0_i32_1 = arith.constant 0 : i32
    return %c0_i32, %c0_i32_0 : i32, i32
  }
  func.func @transform_7(%arg0: i32) -> (i32, i32) {
    %c0_i32 = arith.constant 0 : i32
    %c0_i32_0 = arith.constant 0 : i32
    %c0_i32_1 = arith.constant 0 : i32
    return %c0_i32, %c0_i32_0 : i32, i32
  }
  func.func @transform_8(%arg0: i32) -> (i32, i32) {
    %c0_i32 = arith.constant 0 : i32
    %c0_i32_0 = arith.constant 0 : i32
    %c0_i32_1 = arith.constant 0 : i32
    return %c0_i32, %c0_i32_0 : i32, i32
  }
  func.func @transform_9(%arg0: i32) -> (i32, i32) {
    %c0_i32 = arith.constant 0 : i32
    %c0_i32_0 = arith.constant 0 : i32
    return %c0_i32, %arg0 : i32, i32
  }
}

</mosaic_0001>

<bundles_post_ra>
// kernel: tpu_custom_call.1
= control target key start
LH: loop header
LB: loop body
LE: loop exit
PB: predicated region body
PF: predicated region fallthrough
CT: control target
= control target key end

     0   :  { %s632_s0 = inlined_call_operand.vmem [shape: f32[8,4], index: 0, kind: input, shape index: {}]   ;;  %s633_s1 = inlined_call_operand.vmem [shape: f32[1,8], index: 1, kind: input, shape index: {}]   ;;  %s634_s2 = inlined_call_operand.vmem [shape: f32[4,32], index: 2, kind: input, shape index: {}]   ;;  %s635_s3 = inlined_call_operand.vmem [shape: f32[32,1], index: 3, kind: input, shape index: {}]   ;;  %s636_s4 = inlined_call_operand.vmem [shape: f32[32,1], index: 4, kind: input, shape index: {}]   ;;  %s637_s5 = inlined_call_operand.vmem [shape: f32[32,32], index: 5, kind: input, shape index: {}]   ;;  %s638_s6 = inlined_call_operand.vmem [shape: f32[32,1], index: 6, kind: input, shape index: {}]   ;;  %s639_s7 = inlined_call_operand.vmem [shape: f32[1,32], index: 7, kind: input, shape index: {}]   ;;  %s640_s8 = inlined_call_operand.<no memory space> [shape: f32[1,1], index: 8, kind: input, shape index: {}]   ;;  %s641_s9 = inlined_call_operand.hbm [shape: f32[1,8], index: 9, kind: output, shape index: {}]  }
   0x1   :  { %v14_v0 = vstv %s640_s8 }
   0x2   :  { %15 = vst [vmem:[#allocation2] sm:$0x1] %v14_v0 }
   0x3   :  { %v35_v1 = vld [vmem:[%s634_s2] sm:$0xf]  ;;  %vm109_vm0 = vcmask 1043456   ;;  %vm60_vm1 = vcmask 31744  }
   0x4   :  { %v44_v2 = vld [vmem:[%s632_s0] sm:$0xff]  ;;  %392 = vmatpush.msk.msra.mxu0 %vm109_vm0, %v35_v1  ;;  %414 = vmatpush.msk.msra.mxu2 %vm109_vm0, %v35_v1 }
   0x5   :  { %393 = vmatmul.msk.f32.vlgmr.msra.gmra.mxu0 %vm60_vm1, %v44_v2  ;;  %415 = vmatpush.msk.msra.mxu3 %vm109_vm0, %v35_v1 }
   0x6   :  { %16 = vsyncpa [#allocation4], 0  ;;  %v45_v3 = vld [vmem:[%s632_s0 + $0x8] sm:$0xff]  ;;  %v50_v4 = vld [vmem:[%s632_s0 + $0x30] sm:$0xff]  ;;  %v448_v5 = vmov 0   ;;  %vm298_vm2 = vcmask 261120  }
   0x7   :  { %399 = vmatmul.msk.f32.vlgmr.msra.gmra.mxu2 %vm60_vm1, %v50_v4  ;;  %420 = vset.pattern.permute.xlu2 %v448_v5  ;;  %v36_v6 = vld [vmem:[%s635_s3] sm:$0xff]  ;;  %v54_v7 = vld [vmem:[%s632_s0 + $0x50] sm:$0xff]  ;;  %v51_v9 = vld [vmem:[%s632_s0 + $0x38] sm:$0xff]  ;;  %s449_s27 = smov [#allocation3]   ;;  %s383_s10 = sshll.u32 %s641_s9, 4  ;;  %s384_s10 = int_to_ptr.hbm [resolvable:$true] %s383_s10 }
   0x8   :  { %213 = vperm.xlu2 %420, %v36_v6   ;;  %403 = vmatmul.msk.f32.vlgmr.msra.gmra.mxu3 %vm60_vm1, %v54_v7  ;;  %v46_v8 = vld [vmem:[%s632_s0 + $0x10] sm:$0xff]  ;;  %v55_v11 = vld [vmem:[%s632_s0 + $0x58] sm:$0xff]  ;;  %v52_v13 = vld [vmem:[%s632_s0 + $0x40] sm:$0xff]  ;;  %s381_s28 = sshll.u32 %s449_s27, 4  ;;  %s382_s28 = int_to_ptr.vmem [resolvable:$true] %s381_s28 }
   0x9   :  { %418 = vset.pattern.permute.xlu0 %v448_v5  ;;  %419 = vset.pattern.permute.xlu1 %v448_v5  ;;  %v42_v10 = vld [vmem:[%s636_s4 + $0x10] sm:$0xff]  ;;  %v47_v12 = vld [vmem:[%s632_s0 + $0x18] sm:$0xff]  ;;  %v56_v14 = vld [vmem:[%s632_s0 + $0x60] sm:$0xff] }
   0xa   :  { %v48_v15 = vld [vmem:[%s632_s0 + $0x20] sm:$0xff]  ;;  %v53_v16 = vld [vmem:[%s632_s0 + $0x48] sm:$0xff]  ;;  %v58_v19 = vld [vmem:[%s632_s0 + $0x70] sm:$0xff] }
   0xb   :  { %v57_v17 = vld [vmem:[%s632_s0 + $0x68] sm:$0xff]  ;;  %v59_v20 = vld [vmem:[%s632_s0 + $0x78] sm:$0xff]  ;;  %v38_v22 = vld [vmem:[%s635_s3 + $0x10] sm:$0xff] }
   0xc   :  { %v49_v18 = vld [vmem:[%s632_s0 + $0x28] sm:$0xff]  ;;  %v39_v21 = vld [vmem:[%s635_s3 + $0x18] sm:$0xff]  ;;  %v40_v28 = vld [vmem:[%s636_s4] sm:$0xff] }
   0xd   :  { %394 = vmatmul.msk.f32.gmra.mxu0 %vm60_vm1, %v45_v3  ;;  %228 = vperm.xlu0 %418, %v39_v21   ;;  %v37_v23 = vld [vmem:[%s635_s3 + $0x8] sm:$0xff]  ;;  %v43_v25 = vld [vmem:[%s636_s4 + $0x18] sm:$0xff]  ;;  %v276_v31 = vld [vmem:[%s638_s6 + $0x10] sm:$0xff] }
   0xe   :  { %218 = vperm.xlu1 %419, %v37_v23   ;;  %v41_v24 = vld [vmem:[%s636_s4 + $0x8] sm:$0xff]  ;;  %v277_v27 = vld [vmem:[%s638_s6 + $0x18] sm:$0xff]  ;;  %v345_v33 = vld [vmem:[#allocation2] sm:$0x1] }
   0xf   :  { %400 = vmatmul.msk.f32.gmra.mxu2 %vm60_vm1, %v51_v9  ;;  %v275_v30 = vld [vmem:[%s638_s6 + $0x8] sm:$0xff]  ;;  %v274_v34 = vld [vmem:[%s638_s6] sm:$0xff] }
  0x10   :  { %254 = vperm.xlu2 %420, %v42_v10   ;;  %404 = vmatmul.msk.f32.gmra.mxu3 %vm60_vm1, %v55_v11  ;;  %v421_v55 = vld [vmem:[%s633_s1] ss:$0 sm:$0xff] }
  0x15   :  { %395 = vmatmul.msk.f32.gmra.mxu0 %vm60_vm1, %v46_v8  ;;  %223 = vperm.xlu0 %418, %v38_v22  }
  0x16   :  { %259 = vperm.xlu1 %419, %v43_v25  }
  0x17   :  { %401 = vmatmul.msk.f32.gmra.mxu2 %vm60_vm1, %v52_v13  ;;  %v270_v13 = vld [vmem:[%s637_s5] sm:$0xff] }
  0x18   :  { %405 = vmatmul.msk.f32.gmra.mxu3 %vm60_vm1, %v56_v14  ;;  %v271_v14 = vld [vmem:[%s637_s5 + $0x8] sm:$0xff] }
  0x1d   :  { %396 = vmatmul.msk.f32.gmra.mxu0 %vm60_vm1, %v47_v12  ;;  %249 = vperm.xlu0 %418, %v41_v24  }
  0x1e   :  { %244 = vperm.xlu1 %419, %v40_v28  }
  0x1f   :  { %402 = vmatmul.msk.f32.gmra.mxu2 %vm60_vm1, %v53_v16  ;;  %v273_v16 = vld [vmem:[%s637_s5 + $0x18] sm:$0xff] }
  0x20   :  { %406 = vmatmul.msk.f32.gmra.mxu3 %vm60_vm1, %v57_v17 }
  0x25   :  { %397 = vmatmul.msk.f32.gmra.mxu0 %vm60_vm1, %v48_v15  ;;  %295 = vperm.xlu0 %418, %v277_v27   ;;  %v272_v15 = vld [vmem:[%s637_s5 + $0x10] sm:$0xff] }
  0x26   :  { %290 = vperm.xlu1 %419, %v276_v31  }
  0x28   :  { %407 = vmatmul.msk.f32.gmra.mxu3 %vm60_vm1, %v58_v19 }
  0x2d   :  { %398 = vmatmul.msk.f32.gmra.mxu0 %vm60_vm1, %v49_v18  ;;  %285 = vperm.xlu0 %418, %v275_v30  }
  0x2e   :  { %280 = vperm.xlu1 %419, %v274_v34  }
  0x30   :  { %408 = vmatmul.msk.f32.gmra.mxu3 %vm60_vm1, %v59_v20 }
  0x35   :  { %348 = vperm.xlu0 %418, %v345_v33   ;;  %v344_v33 = vld [vmem:[%s639_s7] sm:$0x1] }
  0x62   :  { %v214_v48 = vpop.permute.xlu2 %213 }
  0x63   :  { %v234_v63 = vmul.f32 %v421_v55, %v214_v48 }
  0x6a   :  { %v255_v49 = vpop.permute.xlu2 %254 }
  0x7f   :  { %v229_v51 = vpop.permute.xlu0 %228 }
  0x80   :  { %v219_v53 = vpop.permute.xlu1 %218  ;;  %v237_v60 = vmul.f32 %v421_v55, %v229_v51 }
  0x81   :  { %v235_v59 = vmul.f32 %v421_v55, %v219_v53 }
  0x82   :  { %v130_v26 = vpop.f32.mrf.mxu0 }
  0x83   :  { %178 = vxpose.xlu2.b32.start [1/16] (narrow) %v130_v26, 32 }
  0x87   :  { %v224_v56 = vpop.permute.xlu0 %223 }
  0x88   :  { %v236_v57 = vmul.f32 %v421_v55, %v224_v56  ;;  %v260_v58 = vpop.permute.xlu1 %259 }
  0x8a   :  { %v133_v29 = vpop.f32.mrf.mxu0  ;;  %v148_v38 = vpop.f32.mrf.mxu2 }
  0x8b   :  { %179 = vxpose.xlu2.b32.cont [2/16] (narrow) %v133_v29, 32  ;;  %v160_v41 = vpop.f32.mrf.mxu3 }
  0x8f   :  { %v250_v5 = vpop.permute.xlu0 %249 }
  0x90   :  { %v245_v8 = vpop.permute.xlu1 %244 }
  0x92   :  { %v136_v32 = vpop.f32.mrf.mxu0  ;;  %v151_v39 = vpop.f32.mrf.mxu2 }
  0x93   :  { %180 = vxpose.xlu2.b32.cont [3/16] (narrow) %v136_v32, 32  ;;  %v163_v43 = vpop.f32.mrf.mxu3 }
  0x97   :  { %v296_v19 = vpop.permute.xlu0 %295 }
  0x98   :  { %v291_v21 = vpop.permute.xlu1 %290 }
  0x9a   :  { %v139_v35 = vpop.f32.mrf.mxu0  ;;  %v154_v40 = vpop.f32.mrf.mxu2 }
  0x9b   :  { %181 = vxpose.xlu2.b32.cont [4/16] (narrow) %v139_v35, 32  ;;  %v166_v44 = vpop.f32.mrf.mxu3 }
  0x9f   :  { %v286_v25 = vpop.permute.xlu0 %285 }
  0xa0   :  { %v281_v28 = vpop.permute.xlu1 %280 }
  0xa2   :  { %v142_v36 = vpop.f32.mrf.mxu0  ;;  %v157_v42 = vpop.f32.mrf.mxu2 }
  0xa3   :  { %182 = vxpose.xlu2.b32.cont [5/16] (narrow) %v142_v36, 32  ;;  %v169_v45 = vpop.f32.mrf.mxu3 }
  0xa7   :  { %v349_v34 = vpop.permute.xlu0 %348 }
  0xa8   :  { %v351_v35 = vperm.slane %v349_v34, 0 }
  0xaa   :  { %v145_v37 = vpop.f32.mrf.mxu0 }
  0xab   :  { %183 = vxpose.xlu2.b32.cont [6/16] (narrow) %v145_v37, 32  ;;  %v172_v46 = vpop.f32.mrf.mxu3 }
  0xb3   :  { %184 = vxpose.xlu2.b32.cont [7/16] (narrow) %v148_v38, 32  ;;  %v175_v47 = vpop.f32.mrf.mxu3 }
  0xbb   :  { %185 = vxpose.xlu2.b32.cont [8/16] (narrow) %v151_v39, 32 }
  0xc3   :  { %186 = vxpose.xlu2.b32.cont [9/16] (narrow) %v154_v40, 32 }
  0xcb   :  { %187 = vxpose.xlu2.b32.cont [10/16] (narrow) %v157_v42, 32 }
  0xd3   :  { %188 = vxpose.xlu2.b32.cont [11/16] (narrow) %v160_v41, 32 }
  0xdb   :  { %189 = vxpose.xlu2.b32.cont [12/16] (narrow) %v163_v43, 32 }
  0xe3   :  { %190 = vxpose.xlu2.b32.cont [13/16] (narrow) %v166_v44, 32 }
  0xeb   :  { %191 = vxpose.xlu2.b32.cont [14/16] (narrow) %v169_v45, 32 }
  0xf3   :  { %192 = vxpose.xlu2.b32.cont [15/16] (narrow) %v172_v46, 32 }
  0xfb   :  { %193 = vxpose.xlu2.b32.end [16/16] (narrow) %v175_v47, 32 }
 0x11c   :  { %v194_v50 = vpop.trf.xlu2 }
 0x11d   :  { %v238_v2 = vadd.f32 %v234_v63, %v194_v50 }
 0x11f   :  { %v262_v10 = vadd.f32 %v245_v8, %v238_v2 }
 0x121   :  { %v266_v12 = vmax.f32 %v262_v10, 0.0 }
 0x124   :  { %v195_v52 = vpop.trf.xlu2 }
 0x125   :  { %v239_v0 = vadd.f32 %v235_v59, %v195_v52 }
 0x127   :  { %v263_v7 = vadd.f32 %v250_v5, %v239_v0 }
 0x129   :  { %v267_v11 = vmax.f32 %v263_v7, 0.0 }
 0x12c   :  { %v196_v54 = vpop.trf.xlu2 }
 0x12d   :  { %v240_v61 = vadd.f32 %v236_v57, %v196_v54 }
 0x12f   :  { %v264_v4 = vadd.f32 %v255_v49, %v240_v61 }
 0x131   :  { %v268_v9 = vmax.f32 %v264_v4, 0.0 }
 0x134   :  { %v197_v62 = vpop.trf.xlu2 }
 0x135   :  { %v241_v1 = vadd.f32 %v237_v60, %v197_v62 }
 0x137   :  { %v265_v3 = vadd.f32 %v260_v58, %v241_v1 }
 0x139   :  { %v269_v6 = vmax.f32 %v265_v3, 0.0 }
 0x13b   :  { %323 = vmatpush.msra.mxu1 %v269_v6 }
 0x13d   :  { %324 = vmatpush.msra.mxu1 %v268_v9 }
 0x13f   :  { %325 = vmatpush.msra.mxu1 %v267_v11 }
 0x141   :  { %326 = vmatpush.msra.mxu1 %v266_v12 }
 0x142   :  { %409 = vmatmul.msk.f32.vlgmr.msra.gmra.mxu1 %vm298_vm2, %v270_v13 }
 0x14a   :  { %410 = vmatmul.msk.f32.gmra.mxu1 %vm298_vm2, %v271_v14 }
 0x152   :  { %411 = vmatmul.msk.f32.gmra.mxu1 %vm298_vm2, %v272_v15 }
 0x15a   :  { %412 = vmatmul.msk.f32.gmra.mxu1 %vm298_vm2, %v273_v16 }
 0x1bf   :  { %v328_v17 = vpop.f32.mrf.mxu1 }
 0x1c0   :  { %v329_v29 = vadd.f32 %v328_v17, %v281_v28 }
 0x1c2   :  { %v340_v32 = vmax.f32 %v329_v29, 0.0 }
 0x1c7   :  { %v331_v18 = vpop.f32.mrf.mxu1 }
 0x1c8   :  { %v332_v26 = vadd.f32 %v331_v18, %v286_v25 }
 0x1ca   :  { %v341_v31 = vmax.f32 %v332_v26, 0.0 }
 0x1cf   :  { %v334_v20 = vpop.f32.mrf.mxu1 }
 0x1d0   :  { %v335_v23 = vadd.f32 %v334_v20, %v291_v21 }
 0x1d2   :  { %v342_v30 = vmax.f32 %v335_v23, 0.0 }
 0x1d7   :  { %v337_v22 = vpop.f32.mrf.mxu1 }
 0x1d8   :  { %v338_v24 = vadd.f32 %v337_v22, %v296_v19 }
 0x1da   :  { %v343_v27 = vmax.f32 %v338_v24, 0.0 }
 0x1dc   :  { %367 = vmatpush.msrb.mxu2 %v343_v27 }
 0x1de   :  { %368 = vmatpush.msrb.mxu2 %v342_v30 }
 0x1e0   :  { %369 = vmatpush.msrb.mxu2 %v341_v31 }
 0x1e2   :  { %370 = vmatpush.msrb.mxu2 %v340_v32 }
 0x1e3   :  { %413 = vmatmul.msk.f32.vlgmr.msrb.gmra.mxu2 %vm298_vm2, %v344_v33 }
 0x266   :  { %v372_v36 = vpop.f32.mrf.mxu2 }
 0x267   :  { %v373_v37 = vadd.f32 %v372_v36, %v351_v35 }
 0x269   :  { %375 = vst [vmem:[#allocation3] sm:$0x1] %v373_v37 }
 0x26a   :  { %386 = dma.vmem_to_hbm [thread:$0]  %s382_s28, 16, %s384_s10, [#allocation4]  }
 0x26b   :  { %446 = dma.done.wait [#allocation4], 16  }
 0x26c   :  { %447 = vsyncadd [#allocation4], 4294967280 }
 0x26d   :  { %391 = vsyncpa [#allocation4], 1 }

</bundles_post_ra>
